<compile_context>
chip_gen: v7x
topology: tpu7x:2x2x1
jax: 0.10.0
libtpu: 0.0.40
codegen_flags: <defaults>
</compile_context>

<pallas_src>
import functools

import jax
import jax.numpy as jnp
from jax.experimental import pallas as pl
from jax.experimental.pallas import tpu as pltpu

EPS = 1e-5
NEG_SLOPE = 0.01
H1 = 128          # hidden 1 width
H2 = 64           # hidden 2 width (padded to H2_PAD inside the kernel weights)
H2_PAD = 128
_VMEM_BUDGET = 24 * 1024 * 1024   # conservative tile budget (fits v7x 64 MiB too)
_VMEM_LIMIT = 32 * 1024 * 1024


def _round_up(x, m):
    return ((x + m - 1) // m) * m


def _leaky_relu(x):
    return jnp.where(x >= 0, x, NEG_SLOPE * x)


# ----------------------------------------------------------------------------
# Kernel: 3 matmuls + bias + LeakyReLU on one (TB, input_dim) batch tile.
# Weights are VMEM-resident (constant index_map); x / out are streamed.
# ----------------------------------------------------------------------------
def mlp_kernel(x_ref, w1_ref, b1_ref, w2_ref, b2_ref, w3_ref, b3_ref, o_ref):
    # x tile arrives f32; cast to bf16 in-kernel (saves a wrapper-side HBM pass).
    x = x_ref[...].astype(jnp.bfloat16)

    # ---- Linear(input_dim, 128) with BN1 folded in, then LeakyReLU ----
    h = jnp.dot(x, w1_ref[...], preferred_element_type=jnp.float32) + b1_ref[...]
    h = _leaky_relu(h)
    # Dropout(0.3): identity in eval mode.

    # ---- Linear(128, 64->128 padded) with BN2 folded in, then LeakyReLU ----
    h = jnp.dot(h.astype(jnp.bfloat16), w2_ref[...],
                preferred_element_type=jnp.float32) + b2_ref[...]
    h = _leaky_relu(h)
    # Dropout(0.3): identity in eval mode.

    # ---- Linear(64->128 padded, output_dim), unpadded lane-masked store ----
    o_ref[...] = (jnp.dot(h.astype(jnp.bfloat16), w3_ref[...],
                          preferred_element_type=jnp.float32) + b3_ref[...])


def _fold_bn(w, b, gamma, beta, mean, var):
    """Fold eval-mode BatchNorm1d into the preceding Linear (f32)."""
    scale = gamma / jnp.sqrt(var + EPS)          # (1, F)
    w_f = w * scale                              # (in, F) * (1, F)
    b_f = (b - mean) * scale + beta              # (1, F)
    return w_f, b_f


def prepare_params(params):
    """One-time parameter prep (hoisted out of the per-call path).

    Folds the eval-mode BatchNorms into the adjacent Linears, pads the second
    hidden layer to 128 lanes, and casts matmul operands to bf16.
    Returns (w1, b1, w2, b2, w3, b3) ready for `mlp_forward`.
    """
    out_dim = params["w3"].shape[1]

    w1f, b1f = _fold_bn(params["w1"], params["b1"], params["g1"],
                        params["be1"], params["m1"], params["v1"])
    w2f, b2f = _fold_bn(params["w2"], params["b2"], params["g2"],
                        params["be2"], params["m2"], params["v2"])

    # Pad hidden-2 from 64 to 128 columns (lane-dense intermediate, fuller MXU).
    w2p = jnp.zeros((H1, H2_PAD), jnp.float32).at[:, :H2].set(w2f)
    b2p = jnp.zeros((1, H2_PAD), jnp.float32).at[:, :H2].set(b2f)
    # Extend w3 rows to 128 with zeros (padded hidden columns contribute 0).
    w3p = jnp.zeros((H2_PAD, out_dim), jnp.float32).at[:H2, :].set(params["w3"])
    b3p = params["b3"]

    return (w1f.astype(jnp.bfloat16), b1f,
            w2p.astype(jnp.bfloat16), b2p,
            w3p.astype(jnp.bfloat16), b3p)


def _choose_tb(n, input_dim, out_dim, requested):
    """Pick a batch tile that amortizes step overhead but stays in VMEM budget."""
    # Streamed, double-buffered x + out tiles (f32) plus in-kernel intermediates.
    per_row = 2 * 4 * (input_dim + out_dim) + 4 * 4 * H1
    cap = max(8, (_VMEM_BUDGET // per_row) // 8 * 8)
    tb = min(requested, cap, _round_up(n, 8))
    return max(8, _round_up(tb, 8))


@functools.partial(jax.jit, static_argnames=("tb",))
def mlp_forward(x, w1, b1, w2, b2, w3, b3, tb=2048):
    """x: (N, input_dim) float32. Weights from `prepare_params`."""
    n, input_dim = x.shape
    out_dim = w3.shape[1]

    tb = _choose_tb(n, input_dim, out_dim, tb)
    grid = (pl.cdiv(n, tb),)

    in_specs = [
        pl.BlockSpec((tb, input_dim), lambda i: (i, 0)),   # x: streamed per tile
        pl.BlockSpec(w1.shape, lambda i: (0, 0)),          # params: VMEM-resident
        pl.BlockSpec(b1.shape, lambda i: (0, 0)),
        pl.BlockSpec(w2.shape, lambda i: (0, 0)),
        pl.BlockSpec(b2.shape, lambda i: (0, 0)),
        pl.BlockSpec(w3.shape, lambda i: (0, 0)),
        pl.BlockSpec(b3.shape, lambda i: (0, 0)),
    ]
    # Unpadded output: block last dim == full array last dim, (8,128) rule OK.
    out_specs = pl.BlockSpec((tb, out_dim), lambda i: (i, 0))

    flops = 2 * n * (input_dim * H1 + H1 * H2_PAD + H2_PAD * out_dim)
    bytes_accessed = (n * (input_dim * 4 + out_dim * 4)
                      + w1.size * 2 + w2.size * 2 + w3.size * 2
                      + (b1.size + b2.size + b3.size) * 4)

    return pl.pallas_call(
        mlp_kernel,
        out_shape=jax.ShapeDtypeStruct((n, out_dim), jnp.float32),
        grid=grid,
        in_specs=in_specs,
        out_specs=out_specs,
        compiler_params=pltpu.CompilerParams(
            dimension_semantics=("parallel",),
            vmem_limit_bytes=_VMEM_LIMIT),
        cost_estimate=pl.CostEstimate(
            flops=int(flops), transcendentals=0,
            bytes_accessed=int(bytes_accessed)),
    )(x, w1, b1, w2, b2, w3, b3)


def init_params(key, input_dim, output_dim):
    """Deterministic parameter init matching the PyTorch module's shapes."""
    k1, k2, k3 = jax.random.split(key, 3)

    def linear_init(k, fan_in, fan_out):
        bound = 1.0 / jnp.sqrt(jnp.float32(fan_in))
        kw, kb = jax.random.split(k)
        w = jax.random.uniform(kw, (fan_in, fan_out), jnp.float32, -bound, bound)
        b = jax.random.uniform(kb, (1, fan_out), jnp.float32, -bound, bound)
        return w, b

    w1, b1 = linear_init(k1, input_dim, H1)
    w2, b2 = linear_init(k2, H1, H2)
    w3, b3 = linear_init(k3, H2, output_dim)

    params = dict(
        w1=w1, b1=b1,
        g1=jnp.ones((1, H1), jnp.float32), be1=jnp.zeros((1, H1), jnp.float32),
        m1=jnp.zeros((1, H1), jnp.float32), v1=jnp.ones((1, H1), jnp.float32),
        w2=w2, b2=b2,
        g2=jnp.ones((1, H2), jnp.float32), be2=jnp.zeros((1, H2), jnp.float32),
        m2=jnp.zeros((1, H2), jnp.float32), v2=jnp.ones((1, H2), jnp.float32),
        w3=w3, b3=b3,
    )
    return params


def reference_forward(x, p):
    """Pure-JAX f32 reference (same eval-mode semantics as the PyTorch module)."""
    h = x @ p["w1"] + p["b1"]
    h = (h - p["m1"]) * (p["g1"] / jnp.sqrt(p["v1"] + EPS)) + p["be1"]
    h = jnp.where(h >= 0, h, NEG_SLOPE * h)
    h = h @ p["w2"] + p["b2"]
    h = (h - p["m2"]) * (p["g2"] / jnp.sqrt(p["v2"] + EPS)) + p["be2"]
    h = jnp.where(h >= 0, h, NEG_SLOPE * h)
    return h @ p["w3"] + p["b3"]


if __name__ == "__main__":
    key = jax.random.PRNGKey(0)
    kx, kp = jax.random.split(key)

    batch, input_dim, output_dim = 8, 32, 10
    x = jax.random.normal(kx, (batch, input_dim), jnp.float32)
    params = init_params(kp, input_dim, output_dim)

    # One-time weight prep (BN folding, padding, bf16 casts) — out of hot path.
    folded = prepare_params(params)
    folded = jax.tree_util.tree_map(jax.block_until_ready, folded)

    out = mlp_forward(x, *folded)
    out = jax.block_until_ready(out)

    ref = reference_forward(x, params)
    assert out.shape == (batch, output_dim)
    # Loose tolerance: kernel uses bf16 matmul operands (f32 accumulation).
    assert jnp.allclose(out, ref, atol=5e-2, rtol=5e-2)

    print("KERNEL_OK")
</pallas_src>

<mosaic_0001>
module attributes {stable_mosaic.version = 11 : i64} {
  func.func @mlp_kernel(%arg0: i32, %arg1: memref<8x32xf32, #tpu.memory_space<vmem>>, %arg2: memref<32x128xbf16, #tpu.memory_space<vmem>>, %arg3: memref<1x128xf32, #tpu.memory_space<vmem>>, %arg4: memref<128x128xbf16, #tpu.memory_space<vmem>>, %arg5: memref<1x128xf32, #tpu.memory_space<vmem>>, %arg6: memref<128x10xbf16, #tpu.memory_space<vmem>>, %arg7: memref<1x10xf32, #tpu.memory_space<vmem>>, %arg8: memref<8x10xf32, #tpu.memory_space<vmem>>) attributes {dimension_semantics = [#tpu.dimension_semantics<parallel>], iteration_bounds = array<i64: 1>, scalar_prefetch = 0 : i64, scratch_operands = 0 : i64, tpu.core_type = #tpu.core_type<tc>, window_params = [{transform_indices = @transform_0, window_bounds = array<i64: 8, 32>}, {pipeline_mode = #tpu.pipeline_mode<synchronous>, transform_indices = @transform_1, window_bounds = array<i64: 32, 128>}, {pipeline_mode = #tpu.pipeline_mode<synchronous>, transform_indices = @transform_2, window_bounds = array<i64: 1, 128>}, {pipeline_mode = #tpu.pipeline_mode<synchronous>, transform_indices = @transform_3, window_bounds = array<i64: 128, 128>}, {pipeline_mode = #tpu.pipeline_mode<synchronous>, transform_indices = @transform_4, window_bounds = array<i64: 1, 128>}, {pipeline_mode = #tpu.pipeline_mode<synchronous>, transform_indices = @transform_5, window_bounds = array<i64: 128, 10>}, {pipeline_mode = #tpu.pipeline_mode<synchronous>, transform_indices = @transform_6, window_bounds = array<i64: 1, 10>}, {transform_indices = @transform_7, window_bounds = array<i64: 8, 10>}]} {
    %c0 = arith.constant 0 : index
    %c0_0 = arith.constant 0 : index
    %0 = vector.load %arg1[%c0, %c0_0] : memref<8x32xf32, #tpu.memory_space<vmem>>, vector<8x32xf32>
    %1 = arith.truncf %0 : vector<8x32xf32> to vector<8x32xbf16>
    %c0_1 = arith.constant 0 : index
    %c0_2 = arith.constant 0 : index
    %2 = vector.load %arg2[%c0_1, %c0_2] : memref<32x128xbf16, #tpu.memory_space<vmem>>, vector<32x128xbf16>
    %cst = arith.constant dense<0.000000e+00> : vector<8x128xf32>
    %3 = tpu.matmul %1, %2, %cst {dimension_numbers = #tpu.dot_dimension_numbers<[1], [0], [0], [1], [0, 0, 1, 1], [], []>} : vector<8x32xbf16>, vector<32x128xbf16>, vector<8x128xf32> -> vector<8x128xf32>
    %c0_3 = arith.constant 0 : index
    %c0_4 = arith.constant 0 : index
    %4 = vector.load %arg3[%c0_3, %c0_4] : memref<1x128xf32, #tpu.memory_space<vmem>>, vector<1x128xf32>
    %5 = vector.broadcast %4 : vector<1x128xf32> to vector<8x128xf32>
    %6 = arith.addf %3, %5 : vector<8x128xf32>
    %cst_5 = arith.constant 0.000000e+00 : f32
    %7 = vector.broadcast %cst_5 : f32 to vector<8x128xf32>
    %8 = arith.cmpf oge, %6, %7 : vector<8x128xf32>
    %cst_6 = arith.constant 0.00999999977 : f32
    %9 = vector.broadcast %cst_6 : f32 to vector<8x128xf32>
    %10 = arith.mulf %9, %6 : vector<8x128xf32>
    %11 = arith.select %8, %6, %10 : vector<8x128xi1>, vector<8x128xf32>
    %12 = arith.truncf %11 : vector<8x128xf32> to vector<8x128xbf16>
    %c0_7 = arith.constant 0 : index
    %c0_8 = arith.constant 0 : index
    %13 = vector.load %arg4[%c0_7, %c0_8] : memref<128x128xbf16, #tpu.memory_space<vmem>>, vector<128x128xbf16>
    %cst_9 = arith.constant dense<0.000000e+00> : vector<8x128xf32>
    %14 = tpu.matmul %12, %13, %cst_9 {dimension_numbers = #tpu.dot_dimension_numbers<[1], [0], [0], [1], [0, 0, 1, 1], [], []>} : vector<8x128xbf16>, vector<128x128xbf16>, vector<8x128xf32> -> vector<8x128xf32>
    %c0_10 = arith.constant 0 : index
    %c0_11 = arith.constant 0 : index
    %15 = vector.load %arg5[%c0_10, %c0_11] : memref<1x128xf32, #tpu.memory_space<vmem>>, vector<1x128xf32>
    %16 = vector.broadcast %15 : vector<1x128xf32> to vector<8x128xf32>
    %17 = arith.addf %14, %16 : vector<8x128xf32>
    %cst_12 = arith.constant 0.000000e+00 : f32
    %18 = vector.broadcast %cst_12 : f32 to vector<8x128xf32>
    %19 = arith.cmpf oge, %17, %18 : vector<8x128xf32>
    %cst_13 = arith.constant 0.00999999977 : f32
    %20 = vector.broadcast %cst_13 : f32 to vector<8x128xf32>
    %21 = arith.mulf %20, %17 : vector<8x128xf32>
    %22 = arith.select %19, %17, %21 : vector<8x128xi1>, vector<8x128xf32>
    %23 = arith.truncf %22 : vector<8x128xf32> to vector<8x128xbf16>
    %c0_14 = arith.constant 0 : index
    %c0_15 = arith.constant 0 : index
    %24 = vector.load %arg6[%c0_14, %c0_15] : memref<128x10xbf16, #tpu.memory_space<vmem>>, vector<128x10xbf16>
    %cst_16 = arith.constant dense<0.000000e+00> : vector<8x10xf32>
    %25 = tpu.matmul %23, %24, %cst_16 {dimension_numbers = #tpu.dot_dimension_numbers<[1], [0], [0], [1], [0, 0, 1, 1], [], []>} : vector<8x128xbf16>, vector<128x10xbf16>, vector<8x10xf32> -> vector<8x10xf32>
    %c0_17 = arith.constant 0 : index
    %c0_18 = arith.constant 0 : index
    %26 = vector.load %arg7[%c0_17, %c0_18] : memref<1x10xf32, #tpu.memory_space<vmem>>, vector<1x10xf32>
    %27 = vector.broadcast %26 : vector<1x10xf32> to vector<8x10xf32>
    %28 = arith.addf %25, %27 : vector<8x10xf32>
    %c0_19 = arith.constant 0 : index
    %c0_20 = arith.constant 0 : index
    %29 = vector.load %arg8[%c0_19, %c0_20] : memref<8x10xf32, #tpu.memory_space<vmem>>, vector<8x10xf32>
    tpu.vector_store %arg8[%c0_19, %c0_20], %28 {strides = array<i32>} : memref<8x10xf32, #tpu.memory_space<vmem>>, vector<8x10xf32>,
    return
  }
  func.func @transform_0(%arg0: i32) -> (i32, i32) {
    %c0_i32 = arith.constant 0 : i32
    %c0_i32_0 = arith.constant 0 : i32
    return %arg0, %c0_i32 : i32, i32
  }
  func.func @transform_1(%arg0: i32) -> (i32, i32) {
    %c0_i32 = arith.constant 0 : i32
    %c0_i32_0 = arith.constant 0 : i32
    %c0_i32_1 = arith.constant 0 : i32
    return %c0_i32, %c0_i32_0 : i32, i32
  }
  func.func @transform_2(%arg0: i32) -> (i32, i32) {
    %c0_i32 = arith.constant 0 : i32
    %c0_i32_0 = arith.constant 0 : i32
    %c0_i32_1 = arith.constant 0 : i32
    return %c0_i32, %c0_i32_0 : i32, i32
  }
  func.func @transform_3(%arg0: i32) -> (i32, i32) {
    %c0_i32 = arith.constant 0 : i32
    %c0_i32_0 = arith.constant 0 : i32
    %c0_i32_1 = arith.constant 0 : i32
    return %c0_i32, %c0_i32_0 : i32, i32
  }
  func.func @transform_4(%arg0: i32) -> (i32, i32) {
    %c0_i32 = arith.constant 0 : i32
    %c0_i32_0 = arith.constant 0 : i32
    %c0_i32_1 = arith.constant 0 : i32
    return %c0_i32, %c0_i32_0 : i32, i32
  }
  func.func @transform_5(%arg0: i32) -> (i32, i32) {
    %c0_i32 = arith.constant 0 : i32
    %c0_i32_0 = arith.constant 0 : i32
    %c0_i32_1 = arith.constant 0 : i32
    return %c0_i32, %c0_i32_0 : i32, i32
  }
  func.func @transform_6(%arg0: i32) -> (i32, i32) {
    %c0_i32 = arith.constant 0 : i32
    %c0_i32_0 = arith.constant 0 : i32
    %c0_i32_1 = arith.constant 0 : i32
    return %c0_i32, %c0_i32_0 : i32, i32
  }
  func.func @transform_7(%arg0: i32) -> (i32, i32) {
    %c0_i32 = arith.constant 0 : i32
    %c0_i32_0 = arith.constant 0 : i32
    return %arg0, %c0_i32 : i32, i32
  }
}

</mosaic_0001>

<bundles_post_ra>
// kernel: mlp_forward.1
= control target key start
LH: loop header
LB: loop body
LE: loop exit
PB: predicated region body
PF: predicated region fallthrough
CT: control target
= control target key end

     0   :  { %12 = vsyncpa [#allocation3], 0  ;;  %s672_s0 = inlined_call_operand.hbm [shape: f32[8,32], index: 0, kind: input, shape index: {}]   ;;  %s673_s1 = inlined_call_operand.vmem [shape: bf16[32,128], index: 1, kind: input, shape index: {}]   ;;  %s674_s2 = inlined_call_operand.vmem [shape: f32[1,128], index: 2, kind: input, shape index: {}]   ;;  %s675_s3 = inlined_call_operand.vmem [shape: bf16[128,128], index: 3, kind: input, shape index: {}]   ;;  %s676_s4 = inlined_call_operand.vmem [shape: f32[1,128], index: 4, kind: input, shape index: {}]   ;;  %s677_s5 = inlined_call_operand.vmem [shape: bf16[128,10], index: 5, kind: input, shape index: {}]   ;;  %s678_s6 = inlined_call_operand.vmem [shape: f32[1,10], index: 6, kind: input, shape index: {}]   ;;  %s679_s7 = inlined_call_operand.hbm [shape: f32[8,10], index: 7, kind: output, shape index: {}]  }
   0x1   :  { %13 = vsyncpa [#allocation4], 0  ;;  %s517_s24 = smov [#allocation2]   ;;  %s469_s28 = scalar_lea.hbm %s672_s0, 128 }
   0x2   :  { %s20_s25 = sshll.u32 %s517_s24, 4  ;;  %p470_p0 = scmp.ne.s32.totalorder %s672_s0, %s469_s28  ;;  %s21_s25 = int_to_ptr.vmem [resolvable:$true] %s20_s25 }
   0x3   :  { %p473_p1 = scmp.lt.u32.totalorder %s469_s28, %s672_s0 }
   0x5   :  { %p475_p2 = pnand %p473_p1, %p470_p0 }
   0x7   :  { %478 = shalt.err (!%p475_p2)
}
   0x8   :  { %s479_s10 = scalar_lea.vmem %s21_s25, 128  ;;  %p484_p4 = scmp.lt.s32.totalorder %s21_s25, %s21_s25 }
   0x9   :  { %p480_p3 = scmp.ne.s32.totalorder %s21_s25, %s479_s10  ;;  %p485_p5 = scmp.lt.s32.totalorder %s479_s10, %s479_s10 }
   0xb   :  { %p486_p6 = por %p485_p5, %p484_p4 }
   0xd   :  { %p487_p7 = pnand %p486_p6, %p480_p3 }
   0xf   :  { %490 = shalt.err (!%p487_p7)
}
  0x10   :  { %23 = dma.hbm_to_vmem [thread:$0]  %s672_s0, 128, %s21_s25, [#allocation3]  }
  0x11   :  { %513 = dma.done.wait [#allocation3], 128  }
  0x12   :  { %514 = vsyncadd [#allocation3], 4294967168  ;;  %v518_v0 = vmov 0.0   ;;  %vm519_vm0 = vmmov 0   ;;  %v451_v1 = vld [vmem:[%s673_s1] sm:$0xff]   ;;  %v452_v2 = vld [vmem:[%s673_s1 + $0x8] sm:$0xff]  }
  0x13   :  { %399 = vmatprep.subr.bf16.mxu0 %v518_v0  ;;  %403 = vmatprep.mubr.msk.bf16.mxu0 %vm519_vm0, %v518_v0  ;;  %v40_v3 = vld [vmem:[#allocation2] sm:$0xff]  ;;  %v454_v6 = vld [vmem:[%s675_s3 + $0x8] sm:$0xff]   ;;  %vm65_vm1 = vcmask 261120   ;;  %v455_v7 = vld [vmem:[%s675_s3 + $0x10] sm:$0xff]   ;;  %vm339_vm4 = vcmask 80896  }
  0x14   :  { %407 = vmatprep.subr.bf16.mxu1 %v518_v0  ;;  %423 = vmatprep.mubr.msk.bf16.mxu1 %vm519_vm0, %v518_v0  ;;  %v453_v4 = vld [vmem:[%s675_s3] sm:$0xff]   ;;  %v41_v5 = vpack.c.bf16 %v40_v3, %v40_v3  ;;  %v456_v8 = vld [vmem:[%s675_s3 + $0x18] sm:$0xff]   ;;  %v458_v10 = vld [vmem:[%s675_s3 + $0x28] sm:$0xff]  }
  0x15   :  { %400 = vmatpush3.bf16.msra.mxu0 %v451_v1  ;;  %408 = vmatpush3.bf16.msra.mxu1 %v453_v4  ;;  %v457_v9 = vld [vmem:[%s675_s3 + $0x20] sm:$0xff]   ;;  %v459_v11 = vld [vmem:[%s675_s3 + $0x30] sm:$0xff]   ;;  %v460_v12 = vld [vmem:[%s675_s3 + $0x38] sm:$0xff]  }
  0x16   :  { %401 = vmatprep.subr.bf16.mxu0 %v518_v0  ;;  %409 = vmatprep.subr.bf16.mxu1 %v518_v0  ;;  %v461_v13 = vld [vmem:[%s677_s5] sm:$0xff]   ;;  %v462_v14 = vld [vmem:[%s677_s5 + $0x8] sm:$0xff]   ;;  %v463_v15 = vld [vmem:[%s677_s5 + $0x10] sm:$0xff]  }
  0x17   :  { %v464_v16 = vld [vmem:[%s677_s5 + $0x18] sm:$0xff]   ;;  %v465_v17 = vld [vmem:[%s677_s5 + $0x20] sm:$0xff]   ;;  %v466_v18 = vld [vmem:[%s677_s5 + $0x28] sm:$0xff]  }
  0x18   :  { %v356_v19 = vld [vmem:[%s674_s2] ss:$0 sm:$0xff]  ;;  %v467_v28 = vld [vmem:[%s677_s5 + $0x30] sm:$0xff]   ;;  %v468_v29 = vld [vmem:[%s677_s5 + $0x38] sm:$0xff]   ;;  %s520_s5 = smov [#allocation5]  }
  0x19   :  { %402 = vmatpush3.bf16.msra.mxu0 %v452_v2  ;;  %410 = vmatpush3.bf16.msra.mxu1 %v454_v6  ;;  %v360_v30 = vld [vmem:[%s676_s4] ss:$0 sm:$0xff]  ;;  %s347_s26 = sshll.u32 %s520_s5, 4  ;;  %s348_s26 = int_to_ptr.vmem [resolvable:$true] %s347_s26 }
  0x1a   :  { %427 = vmatprep.subr.bf16.mxu0 %v518_v0  ;;  %411 = vmatprep.subr.bf16.mxu1 %v518_v0  ;;  %v369_v39 = vld [vmem:[%s678_s6] ss:$0 sm:$0xff]  ;;  %s491_s4 = scalar_lea.vmem %s348_s26, 128  ;;  %p496_p9 = scmp.lt.s32.totalorder %s348_s26, %s348_s26 }
  0x1b   :  { %p492_p8 = scmp.ne.s32.totalorder %s348_s26, %s491_s4  ;;  %p497_p10 = scmp.lt.s32.totalorder %s491_s4, %s491_s4 }
  0x1c   :  { %404 = vmatmul.mubr.msk.bf16.vlgmr.msra.gmra.mrb[0].mxu0 %vm65_vm1, %v41_v5 }
  0x1d   :  { %443 = vmatprep.mubr.msk.bf16.mxu0 %vm519_vm0, %v518_v0  ;;  %412 = vmatpush3.bf16.msra.mxu1 %v455_v7  ;;  %p498_p11 = por %p497_p10, %p496_p9 }
  0x1e   :  { %413 = vmatprep.subr.bf16.mxu1 %v518_v0  ;;  %428 = vmatpush3.bf16.msra.mxu0 %v461_v13 }
  0x1f   :  { %429 = vmatprep.subr.bf16.mxu0 %v518_v0  ;;  %p499_p12 = pnand %p498_p11, %p492_p8 }
  0x21   :  { %414 = vmatpush3.bf16.msra.mxu1 %v456_v8 }
  0x22   :  { %415 = vmatprep.subr.bf16.mxu1 %v518_v0  ;;  %430 = vmatpush3.bf16.msra.mxu0 %v462_v14 }
  0x23   :  { %431 = vmatprep.subr.bf16.mxu0 %v518_v0 }
  0x25   :  { %416 = vmatpush3.bf16.msra.mxu1 %v457_v9 }
  0x26   :  { %417 = vmatprep.subr.bf16.mxu1 %v518_v0  ;;  %432 = vmatpush3.bf16.msra.mxu0 %v463_v15 }
  0x27   :  { %433 = vmatprep.subr.bf16.mxu0 %v518_v0 }
  0x29   :  { %418 = vmatpush3.bf16.msra.mxu1 %v458_v10 }
  0x2a   :  { %419 = vmatprep.subr.bf16.mxu1 %v518_v0  ;;  %434 = vmatpush3.bf16.msra.mxu0 %v464_v16 }
  0x2b   :  { %435 = vmatprep.subr.bf16.mxu0 %v518_v0 }
  0x2d   :  { %420 = vmatpush3.bf16.msra.mxu1 %v459_v11 }
  0x2e   :  { %421 = vmatprep.subr.bf16.mxu1 %v518_v0  ;;  %436 = vmatpush3.bf16.msra.mxu0 %v465_v17 }
  0x2f   :  { %437 = vmatprep.subr.bf16.mxu0 %v518_v0 }
  0x31   :  { %422 = vmatpush3.bf16.msra.mxu1 %v460_v12 }
  0x32   :  { %438 = vmatpush3.bf16.msra.mxu0 %v466_v18 }
  0x33   :  { %439 = vmatprep.subr.bf16.mxu0 %v518_v0 }
  0x36   :  { %440 = vmatpush3.bf16.msra.mxu0 %v467_v28 }
  0x37   :  { %441 = vmatprep.subr.bf16.mxu0 %v518_v0 }
  0x3a   :  { %442 = vmatpush3.bf16.msra.mxu0 %v468_v29 }
  0xef   :  { %v103_v20 = vpop.f32.mrb[0].mxu0 }
  0xf0   :  { %v104_v21 = vadd.f32 %v356_v19, %v103_v20  ;;  %v405_v22 = vpop.f32.mrb[1].mxu0 }
  0xf1   :  { %v106_v23 = vpop.f32.mrb[2].mxu0 }
  0xf2   :  { %vm109_vm2 = vcmp.ge.f32.partialorder %v104_v21, 0.0  ;;  %v110_v24 = vmul.f32 0.01, %v104_v21  ;;  %v406_v25 = vpop.f32.mrb[3].mxu0 }
  0xf4   :  { %v111_v26 = vsel %vm109_vm2, %v104_v21, %v110_v24 }
  0xf5   :  { %v112_v27 = vpack.c.bf16 %v111_v26, %v111_v26 }
  0xf7   :  { %424 = vmatmul.mubr.bf16.vlgmr.msra.gmra.mrb[0].mxu1 %v112_v27 }
 0x1ca   :  { %v218_v31 = vpop.f32.mrb[0].mxu1 }
 0x1cb   :  { %v219_v32 = vadd.f32 %v360_v30, %v218_v31  ;;  %v425_v33 = vpop.f32.mrb[1].mxu1 }
 0x1cc   :  { %v221_v34 = vpop.f32.mrb[2].mxu1 }
 0x1cd   :  { %vm224_vm3 = vcmp.ge.f32.partialorder %v219_v32, 0.0  ;;  %v225_v35 = vmul.f32 0.01, %v219_v32  ;;  %v426_v36 = vpop.f32.mrb[3].mxu1 }
 0x1cf   :  { %v226_v37 = vsel %vm224_vm3, %v219_v32, %v225_v35 }
 0x1d0   :  { %v227_v38 = vpack.c.bf16 %v226_v37, %v226_v37 }
 0x1d2   :  { %444 = vmatmul.mubr.bf16.vlgmr.msra.gmra.mrb[4].mxu0 %v227_v38 }
 0x2a5   :  { %v333_v40 = vpop.f32.mrb[4].mxu0 }
 0x2a6   :  { %v334_v41 = vadd.f32 %v369_v39, %v333_v40  ;;  %v445_v42 = vpop.f32.mrb[5].mxu0 }
 0x2a7   :  { %v336_v43 = vpop.f32.mrb[6].mxu0 }
 0x2a8   :  { %v446_v44 = vpop.f32.mrb[7].mxu0  ;;  %340 = vst.msk [vmem:[#allocation5] sm:$0xff] %vm339_vm4, %v334_v41 }
 0x2a9   :  { %502 = shalt.err (!%p499_p12)
}
 0x2aa   :  { %s503_s6 = scalar_lea.hbm %s679_s7, 128 }
 0x2ab   :  { %p504_p13 = scmp.ne.s32.totalorder %s679_s7, %s503_s6  ;;  %p507_p0 = scmp.lt.u32.totalorder %s503_s6, %s679_s7 }
 0x2ad   :  { %p509_p1 = pnand %p507_p0, %p504_p13 }
 0x2af   :  { %512 = shalt.err (!%p509_p1)
}
 0x2b0   :  { %350 = dma.vmem_to_hbm [thread:$0]  %s348_s26, 128, %s679_s7, [#allocation4]  }
 0x2b1   :  { %515 = dma.done.wait [#allocation4], 128  }
 0x2b2   :  { %516 = vsyncadd [#allocation4], 4294967168 }
 0x2b3   :  { %354 = vsyncpa [#allocation3], 1 }
 0x2b4   :  { %355 = vsyncpa [#allocation4], 1 }

</bundles_post_ra>
